<compile_context>
chip_gen: v6e
topology: v6e:2x2x1
jax: 0.10.0
libtpu: 0.0.40
codegen_flags: <defaults>
</compile_context>

<pallas_src>
import math
import functools
import jax
import jax.numpy as jnp
from jax.experimental import pallas as pl
from jax.experimental.pallas import tpu as pltpu


_GELU_C = math.sqrt(2.0 / math.pi)


def _gelu_tanh(x):
    # GELU with tanh approximation, matching torch.nn.GELU(approximate='tanh')
    return 0.5 * x * (1.0 + jnp.tanh(_GELU_C * (x + 0.044715 * x * x * x)))


def mlp_kernel(x_ref, wfc_ref, bfc_ref, wproj_ref, bproj_ref, o_ref, acc_ref):
    j = pl.program_id(1)                      # hidden-chunk index (reduction axis)

    @pl.when(j == 0)
    def _init():
        # Fold the output bias into the accumulator init.
        acc_ref[...] = jnp.broadcast_to(
            bproj_ref[...].astype(jnp.float32), acc_ref.shape)

    # c_fc chunk: (TM, D) @ (D, TH) on the MXU, f32 accumulate.
    h = jnp.dot(x_ref[...], wfc_ref[...], preferred_element_type=jnp.float32)
    h = h + bfc_ref[...].astype(jnp.float32)
    # GELU (tanh approx) in f32 -- tanh uses the EUP slot (free under MXU).
    h = _gelu_tanh(h)
    # c_proj chunk: (TM, TH) @ (TH, D); accumulate partial output in f32.
    acc_ref[...] += jnp.dot(h.astype(wproj_ref.dtype), wproj_ref[...],
                            preferred_element_type=jnp.float32)

    @pl.when(j == pl.num_programs(1) - 1)
    def _finalize():
        o_ref[...] = acc_ref[...].astype(o_ref.dtype)


def prepare_mlp_params(w_fc, b_fc, w_proj, b_proj):
    """One-time conversion from torch nn.Linear layout (out, in) to the
    kernel's row-major (in, out) layout.  Call once at parameter-load time,
    NOT per forward call (avoids an HBM-rewriting transpose every step)."""
    return w_fc.T, b_fc.reshape(1, -1), w_proj.T, b_proj.reshape(1, -1)


def _pick_hidden_tile(H, max_th=512):
    """Largest MXU/lane-aligned (multiple of 128) divisor of H that is <= max_th.
    Falls back to the full hidden dim (single block) if none exists."""
    if H <= max_th:
        return H
    for th in range(max_th, 0, -128):
        if th % 128 == 0 and H % th == 0:
            return th
    return H


@functools.partial(jax.jit, static_argnames=("tm", "max_th", "vmem_limit_bytes"))
def mlp_forward(x, wfc_t, bfc2d, wproj_t, bproj2d, *, tm=512, max_th=512,
                vmem_limit_bytes=48 * 1024 * 1024):
    """x: (B, T, D).  wfc_t: (D, H), bfc2d: (1, H), wproj_t: (H, D),
       bproj2d: (1, D) -- i.e. the output of prepare_mlp_params."""
    B, T, D = x.shape
    H = wfc_t.shape[1]
    N = B * T

    x2d = x.reshape(N, D)

    # Row-tile size: MXU-aligned when there are enough rows; for micro shapes
    # just use all rows in a single block (block == full dim satisfies the
    # (8,128) divisibility rule).
    if N <= tm:
        tm = N
        n_pad = N
    else:
        n_pad = ((N + tm - 1) // tm) * tm
        if n_pad != N:
            x2d = jnp.pad(x2d, ((0, n_pad - N), (0, 0)))

    th = _pick_hidden_tile(H, max_th)
    grid = (n_pad // tm, H // th)

    itemsize = x.dtype.itemsize
    cost = pl.CostEstimate(
        flops=4 * n_pad * D * H,               # two matmuls, 2*N*D*H FLOPs each
        transcendentals=n_pad * H,             # one tanh per hidden element
        bytes_accessed=(2 * n_pad * D * itemsize
                        + wfc_t.size * wfc_t.dtype.itemsize
                        + wproj_t.size * wproj_t.dtype.itemsize
                        + bfc2d.size * bfc2d.dtype.itemsize
                        + bproj2d.size * bproj2d.dtype.itemsize),
    )

    out = pl.pallas_call(
        mlp_kernel,
        out_shape=jax.ShapeDtypeStruct((n_pad, D), x.dtype),
        grid_spec=pltpu.PrefetchScalarGridSpec(
            num_scalar_prefetch=0,
            grid=grid,
            in_specs=[
                # x tile: streamed over rows, resident across hidden chunks.
                pl.BlockSpec((tm, D), lambda i, j: (i, 0)),
                # c_fc weight / bias chunks: streamed over the hidden axis.
                pl.BlockSpec((D, th), lambda i, j: (0, j)),
                pl.BlockSpec((1, th), lambda i, j: (0, j)),
                # c_proj weight chunk: streamed over the hidden axis.
                pl.BlockSpec((th, D), lambda i, j: (j, 0)),
                # c_proj bias: fully resident.
                pl.BlockSpec((1, D), lambda i, j: (0, 0)),
            ],
            # Output tile resident across the hidden (reduction) axis.
            out_specs=pl.BlockSpec((tm, D), lambda i, j: (i, 0)),
            scratch_shapes=[pltpu.VMEM((tm, D), jnp.float32)],
        ),
        compiler_params=pltpu.CompilerParams(
            dimension_semantics=("parallel", "arbitrary"),
            vmem_limit_bytes=vmem_limit_bytes,
        ),
        cost_estimate=cost,
    )(x2d, wfc_t, bfc2d, wproj_t, bproj2d)

    if n_pad != N:
        out = out[:N]
    return out.reshape(B, T, D)


def _reference(x, w_fc, b_fc, w_proj, b_proj):
    h = jnp.einsum("btd,hd->bth", x, w_fc) + b_fc
    h = _gelu_tanh(h)
    return jnp.einsum("bth,dh->btd", h, w_proj) + b_proj


def _run_case(seed, B, T, D, max_th=512):
    H = 4 * D
    key = jax.random.PRNGKey(0)
    key = jax.random.fold_in(key, seed)
    kx, kwf, kbf, kwp, kbp = jax.random.split(key, 5)

    x = jax.random.normal(kx, (B, T, D), dtype=jnp.float32)
    # Torch nn.Linear layout: weight (out, in), bias (out,)
    w_fc = jax.random.normal(kwf, (H, D), dtype=jnp.float32) * 0.02
    b_fc = jax.random.normal(kbf, (H,), dtype=jnp.float32) * 0.02
    w_proj = jax.random.normal(kwp, (D, H), dtype=jnp.float32) * 0.02
    b_proj = jax.random.normal(kbp, (D,), dtype=jnp.float32) * 0.02

    params = prepare_mlp_params(w_fc, b_fc, w_proj, b_proj)   # once, not per call
    y = mlp_forward(x, *params, max_th=max_th)
    y = jax.block_until_ready(y)

    y_ref = _reference(x, w_fc, b_fc, w_proj, b_proj)
    assert y.shape == (B, T, D)
    assert jnp.allclose(y, y_ref, atol=2e-4, rtol=2e-4), \
        f"mismatch vs reference for case (B={B}, T={T}, D={D})"


if __name__ == "__main__":
    # Case 1: tiny config from the module spec (n_embd=32 -> hidden=128);
    # single block on both axes.
    _run_case(seed=1, B=2, T=8, D=32)
    # Case 2: exercises the row-tiled pipeline + padding path
    # (N = 800 rows -> padded to 1024, grid=(2, 1), TM=512, D=128 lane-dense).
    _run_case(seed=2, B=4, T=200, D=128)
    # Case 3: exercises the hidden-axis reduction + accumulator path
    # (D=256 -> H=1024, TH=512 -> grid=(1, 2)).
    _run_case(seed=3, B=2, T=256, D=256, max_th=512)

    print("KERNEL_OK")
</pallas_src>

<mosaic_0001>
module attributes {stable_mosaic.version = 11 : i64} {
  func.func @mlp_kernel(%arg0: i32, %arg1: i32, %arg2: memref<16x32xf32, #tpu.memory_space<vmem>>, %arg3: memref<32x128xf32, #tpu.memory_space<vmem>>, %arg4: memref<1x128xf32, #tpu.memory_space<vmem>>, %arg5: memref<128x32xf32, #tpu.memory_space<vmem>>, %arg6: memref<1x32xf32, #tpu.memory_space<vmem>>, %arg7: memref<16x32xf32, #tpu.memory_space<vmem>>, %arg8: memref<16x32xf32, #tpu.memory_space<vmem>>) attributes {dimension_semantics = [#tpu.dimension_semantics<parallel>, #tpu.dimension_semantics<arbitrary>], iteration_bounds = array<i64: 1, 1>, scalar_prefetch = 0 : i64, scratch_operands = 1 : i64, tpu.core_type = #tpu.core_type<tc>, window_params = [{transform_indices = @transform_0, window_bounds = array<i64: 16, 32>}, {transform_indices = @transform_1, window_bounds = array<i64: 32, 128>}, {transform_indices = @transform_2, window_bounds = array<i64: 1, 128>}, {transform_indices = @transform_3, window_bounds = array<i64: 128, 32>}, {pipeline_mode = #tpu.pipeline_mode<synchronous>, transform_indices = @transform_4, window_bounds = array<i64: 1, 32>}, {transform_indices = @transform_5, window_bounds = array<i64: 16, 32>}]} {
    %c0_i32 = arith.constant 0 : i32
    %0 = arith.cmpi eq, %arg1, %c0_i32 : i32
    %1 = arith.extui %0 : i1 to i32
    %c0_i32_0 = arith.constant 0 : i32
    %2 = arith.cmpi ne, %1, %c0_i32_0 : i32
    scf.if %2 {
      %c0_19 = arith.constant 0 : index
      %c0_20 = arith.constant 0 : index
      %30 = vector.load %arg6[%c0_19, %c0_20] : memref<1x32xf32, #tpu.memory_space<vmem>>, vector<1x32xf32>
      %31 = vector.shape_cast %30 : vector<1x32xf32> to vector<1x32xf32>
      %32 = vector.broadcast %31 : vector<1x32xf32> to vector<16x32xf32>
      %c0_21 = arith.constant 0 : index
      %c0_22 = arith.constant 0 : index
      %33 = vector.load %arg8[%c0_21, %c0_22] : memref<16x32xf32, #tpu.memory_space<vmem>>, vector<16x32xf32>
      tpu.vector_store %arg8[%c0_21, %c0_22], %32 {strides = array<i32>} : memref<16x32xf32, #tpu.memory_space<vmem>>, vector<16x32xf32>,
    } else {
    }
    %c0 = arith.constant 0 : index
    %c0_1 = arith.constant 0 : index
    %3 = vector.load %arg2[%c0, %c0_1] : memref<16x32xf32, #tpu.memory_space<vmem>>, vector<16x32xf32>
    %c0_2 = arith.constant 0 : index
    %c0_3 = arith.constant 0 : index
    %4 = vector.load %arg3[%c0_2, %c0_3] : memref<32x128xf32, #tpu.memory_space<vmem>>, vector<32x128xf32>
    %cst = arith.constant dense<0.000000e+00> : vector<16x128xf32>
    %5 = tpu.matmul %3, %4, %cst {dimension_numbers = #tpu.dot_dimension_numbers<[1], [0], [0], [1], [0, 0, 1, 1], [], []>} : vector<16x32xf32>, vector<32x128xf32>, vector<16x128xf32> -> vector<16x128xf32>
    %c0_4 = arith.constant 0 : index
    %c0_5 = arith.constant 0 : index
    %6 = vector.load %arg4[%c0_4, %c0_5] : memref<1x128xf32, #tpu.memory_space<vmem>>, vector<1x128xf32>
    %7 = vector.broadcast %6 : vector<1x128xf32> to vector<16x128xf32>
    %8 = arith.addf %5, %7 : vector<16x128xf32>
    %cst_6 = arith.constant 5.000000e-01 : f32
    %9 = vector.broadcast %cst_6 : f32 to vector<16x128xf32>
    %10 = arith.mulf %9, %8 : vector<16x128xf32>
    %cst_7 = arith.constant 4.471500e-02 : f32
    %11 = vector.broadcast %cst_7 : f32 to vector<16x128xf32>
    %12 = arith.mulf %11, %8 : vector<16x128xf32>
    %13 = arith.mulf %12, %8 : vector<16x128xf32>
    %14 = arith.mulf %13, %8 : vector<16x128xf32>
    %15 = arith.addf %8, %14 : vector<16x128xf32>
    %cst_8 = arith.constant 0.797884583 : f32
    %16 = vector.broadcast %cst_8 : f32 to vector<16x128xf32>
    %17 = arith.mulf %16, %15 : vector<16x128xf32>
    %18 = math.tanh %17 : vector<16x128xf32>
    %cst_9 = arith.constant 1.000000e+00 : f32
    %19 = vector.broadcast %cst_9 : f32 to vector<16x128xf32>
    %20 = arith.addf %19, %18 : vector<16x128xf32>
    %21 = arith.mulf %10, %20 : vector<16x128xf32>
    %c0_10 = arith.constant 0 : index
    %c0_11 = arith.constant 0 : index
    %22 = vector.load %arg8[%c0_10, %c0_11] : memref<16x32xf32, #tpu.memory_space<vmem>>, vector<16x32xf32>
    %c0_12 = arith.constant 0 : index
    %c0_13 = arith.constant 0 : index
    %23 = vector.load %arg5[%c0_12, %c0_13] : memref<128x32xf32, #tpu.memory_space<vmem>>, vector<128x32xf32>
    %cst_14 = arith.constant dense<0.000000e+00> : vector<16x32xf32>
    %24 = tpu.matmul %21, %23, %cst_14 {dimension_numbers = #tpu.dot_dimension_numbers<[1], [0], [0], [1], [0, 0, 1, 1], [], []>} : vector<16x128xf32>, vector<128x32xf32>, vector<16x32xf32> -> vector<16x32xf32>
    %25 = arith.addf %22, %24 : vector<16x32xf32>
    %c0_15 = arith.constant 0 : index
    %c0_16 = arith.constant 0 : index
    %26 = vector.load %arg8[%c0_15, %c0_16] : memref<16x32xf32, #tpu.memory_space<vmem>>, vector<16x32xf32>
    tpu.vector_store %arg8[%c0_15, %c0_16], %25 {strides = array<i32>} : memref<16x32xf32, #tpu.memory_space<vmem>>, vector<16x32xf32>,
    %c0_i32_17 = arith.constant 0 : i32
    %27 = arith.cmpi eq, %arg1, %c0_i32_17 : i32
    %28 = arith.extui %27 : i1 to i32
    %c0_i32_18 = arith.constant 0 : i32
    %29 = arith.cmpi ne, %28, %c0_i32_18 : i32
    scf.if %29 {
      %c0_19 = arith.constant 0 : index
      %c0_20 = arith.constant 0 : index
      %30 = vector.load %arg8[%c0_19, %c0_20] : memref<16x32xf32, #tpu.memory_space<vmem>>, vector<16x32xf32>
      %c0_21 = arith.constant 0 : index
      %c0_22 = arith.constant 0 : index
      %31 = vector.load %arg7[%c0_21, %c0_22] : memref<16x32xf32, #tpu.memory_space<vmem>>, vector<16x32xf32>
      tpu.vector_store %arg7[%c0_21, %c0_22], %30 {strides = array<i32>} : memref<16x32xf32, #tpu.memory_space<vmem>>, vector<16x32xf32>,
    } else {
    }
    return
  }
  func.func @transform_0(%arg0: i32, %arg1: i32) -> (i32, i32) {
    %c0_i32 = arith.constant 0 : i32
    %c0_i32_0 = arith.constant 0 : i32
    return %arg0, %c0_i32 : i32, i32
  }
  func.func @transform_1(%arg0: i32, %arg1: i32) -> (i32, i32) {
    %c0_i32 = arith.constant 0 : i32
    %c0_i32_0 = arith.constant 0 : i32
    return %c0_i32, %arg1 : i32, i32
  }
  func.func @transform_2(%arg0: i32, %arg1: i32) -> (i32, i32) {
    %c0_i32 = arith.constant 0 : i32
    %c0_i32_0 = arith.constant 0 : i32
    return %c0_i32, %arg1 : i32, i32
  }
  func.func @transform_3(%arg0: i32, %arg1: i32) -> (i32, i32) {
    %c0_i32 = arith.constant 0 : i32
    %c0_i32_0 = arith.constant 0 : i32
    return %arg1, %c0_i32 : i32, i32
  }
  func.func @transform_4(%arg0: i32, %arg1: i32) -> (i32, i32) {
    %c0_i32 = arith.constant 0 : i32
    %c0_i32_0 = arith.constant 0 : i32
    %c0_i32_1 = arith.constant 0 : i32
    return %c0_i32, %c0_i32_0 : i32, i32
  }
  func.func @transform_5(%arg0: i32, %arg1: i32) -> (i32, i32) {
    %c0_i32 = arith.constant 0 : i32
    %c0_i32_0 = arith.constant 0 : i32
    return %arg0, %c0_i32 : i32, i32
  }
}

</mosaic_0001>

<bundles_post_ra>
// kernel: mlp_forward.1
= control target key start
LH: loop header
LB: loop body
LE: loop exit
PB: predicated region body
PF: predicated region fallthrough
CT: control target
= control target key end

     0   :  { %vm32_vm0 = vcmask 261120   ;;  %s487_s0 = inlined_call_operand.vmem [shape: f32[16,32], index: 0, kind: input, shape index: {}]   ;;  %s488_s1 = inlined_call_operand.vmem [shape: f32[32,128], index: 1, kind: input, shape index: {}]   ;;  %s489_s2 = inlined_call_operand.vmem [shape: f32[1,128], index: 2, kind: input, shape index: {}]   ;;  %s490_s3 = inlined_call_operand.vmem [shape: f32[128,32], index: 3, kind: input, shape index: {}]   ;;  %s491_s4 = inlined_call_operand.vmem [shape: f32[1,32], index: 4, kind: input, shape index: {}]   ;;  %s492_s5 = inlined_call_operand.hbm [shape: f32[16,32], index: 5, kind: output, shape index: {}]  }
   0x1   :  { %v40_v0 = vld [vmem:[%s488_s1 + $0x18] sm:$0xff]  ;;  %v39_v1 = vld [vmem:[%s488_s1 + $0x10] sm:$0xff]  ;;  %v35_v2 = vld [vmem:[%s487_s0] sm:$0xff] }
   0x2   :  { %296 = vmatprep.subr.mxu0 %v40_v0  ;;  %v38_v3 = vld [vmem:[%s488_s1 + $0x8] sm:$0xff]  ;;  %304 = vmatprep.mubr.msk.f32.mxu0 %vm32_vm0, %v35_v2 }
   0x3   :  { %297 = vmatpush3.msra.mxu0 %v40_v0 }
   0x4   :  { %10 = vsyncpa [#allocation4], 0  ;;  %298 = vmatprep.subr.mxu0 %v39_v1  ;;  %v37_v4 = vld [vmem:[%s488_s1] sm:$0xff]  ;;  %v36_v5 = vld [vmem:[%s487_s0 + $0x8] sm:$0xff] }
   0x5   :  { %299 = vmatpush3.msra.mxu0 %v39_v1  ;;  %v165_v6 = vld [vmem:[%s490_s3 + $0x78] sm:$0xff]  ;;  %v164_v7 = vld [vmem:[%s490_s3 + $0x70] sm:$0xff]  ;;  %v163_v8 = vld [vmem:[%s490_s3 + $0x68] sm:$0xff] }
   0x6   :  { %300 = vmatprep.subr.mxu0 %v38_v3  ;;  %307 = vmatprep.subr.mxu1 %v165_v6  ;;  %v162_v9 = vld [vmem:[%s490_s3 + $0x60] sm:$0xff]  ;;  %v161_v10 = vld [vmem:[%s490_s3 + $0x58] sm:$0xff]  ;;  %v160_v11 = vld [vmem:[%s490_s3 + $0x50] sm:$0xff] }
   0x7   :  { %301 = vmatpush3.msra.mxu0 %v38_v3  ;;  %308 = vmatpush3.msra.mxu1 %v165_v6  ;;  %v159_v12 = vld [vmem:[%s490_s3 + $0x48] sm:$0xff]  ;;  %v158_v13 = vld [vmem:[%s490_s3 + $0x40] sm:$0xff]  ;;  %v157_v14 = vld [vmem:[%s490_s3 + $0x38] sm:$0xff] }
   0x8   :  { %302 = vmatprep.subr.mxu0 %v37_v4  ;;  %309 = vmatprep.subr.mxu1 %v164_v7  ;;  %v156_v15 = vld [vmem:[%s490_s3 + $0x30] sm:$0xff]  ;;  %v155_v16 = vld [vmem:[%s490_s3 + $0x28] sm:$0xff]  ;;  %v154_v17 = vld [vmem:[%s490_s3 + $0x20] sm:$0xff] }
   0x9   :  { %303 = vmatpush3.msra.mxu0 %v37_v4  ;;  %310 = vmatpush3.msra.mxu1 %v164_v7  ;;  %v153_v18 = vld [vmem:[%s490_s3 + $0x18] sm:$0xff]  ;;  %v152_v19 = vld [vmem:[%s490_s3 + $0x10] sm:$0xff]  ;;  %v151_v20 = vld [vmem:[%s490_s3 + $0x8] sm:$0xff] }
   0xa   :  { %305 = vmatmul.mubr.msk.f32.vlgmr.msra.gmra.mxu0 %vm32_vm0, %v36_v5  ;;  %311 = vmatprep.subr.mxu1 %v163_v8  ;;  %v150_v21 = vld [vmem:[%s490_s3] sm:$0xff] }
   0xb   :  { %312 = vmatpush3.msra.mxu1 %v163_v8  ;;  %v268_v22 = vld [vmem:[%s491_s4] ss:$0 sm:$0xff] }
   0xc   :  { %313 = vmatprep.subr.mxu1 %v162_v9  ;;  %34 = vst.msk [vmem:[#allocation2 + $0x8] sm:$0xff] %vm32_vm0, %v268_v22  ;;  %33 = vst.msk [vmem:[#allocation2] sm:$0xff] %vm32_vm0, %v268_v22  ;;  %v269_v23 = vld [vmem:[%s489_s2] ss:$0 sm:$0xff]  ;;  %s371_s2 = smov [#allocation3]  }
   0xd   :  { %314 = vmatpush3.msra.mxu1 %v162_v9  ;;  %s257_s3 = sshll.u32 %s371_s2, 4  ;;  %s258_s3 = int_to_ptr.vmem [resolvable:$true] %s257_s3 }
   0xe   :  { %315 = vmatprep.subr.mxu1 %v161_v10  ;;  %s349_s4 = scalar_lea.vmem %s258_s3, 256  ;;  %p354_p1 = scmp.lt.s32.totalorder %s258_s3, %s258_s3 }
   0xf   :  { %316 = vmatpush3.msra.mxu1 %v161_v10  ;;  %p350_p0 = scmp.ne.s32.totalorder %s258_s3, %s349_s4  ;;  %p355_p2 = scmp.lt.s32.totalorder %s349_s4, %s349_s4 }
  0x10   :  { %317 = vmatprep.subr.mxu1 %v160_v11 }
  0x11   :  { %318 = vmatpush3.msra.mxu1 %v160_v11  ;;  %p356_p3 = por %p355_p2, %p354_p1 }
  0x12   :  { %319 = vmatprep.subr.mxu1 %v159_v12 }
  0x13   :  { %320 = vmatpush3.msra.mxu1 %v159_v12  ;;  %v149_v46 = vld [vmem:[#allocation2 + $0x8] sm:$0xff]  ;;  %v148_v48 = vld [vmem:[#allocation2] sm:$0xff]  ;;  %p357_p4 = pnand %p356_p3, %p350_p0 }
  0x14   :  { %321 = vmatprep.subr.mxu1 %v158_v13 }
  0x15   :  { %322 = vmatpush3.msra.mxu1 %v158_v13 }
  0x16   :  { %323 = vmatprep.subr.mxu1 %v157_v14 }
  0x17   :  { %324 = vmatpush3.msra.mxu1 %v157_v14 }
  0x18   :  { %325 = vmatprep.subr.mxu1 %v156_v15 }
  0x19   :  { %326 = vmatpush3.msra.mxu1 %v156_v15 }
  0x1a   :  { %327 = vmatprep.subr.mxu1 %v155_v16 }
  0x1b   :  { %328 = vmatpush3.msra.mxu1 %v155_v16 }
  0x1c   :  { %329 = vmatprep.subr.mxu1 %v154_v17 }
  0x1d   :  { %330 = vmatpush3.msra.mxu1 %v154_v17 }
  0x1e   :  { %331 = vmatprep.subr.mxu1 %v153_v18 }
  0x1f   :  { %332 = vmatpush3.msra.mxu1 %v153_v18 }
  0x20   :  { %333 = vmatprep.subr.mxu1 %v152_v19 }
  0x21   :  { %334 = vmatpush3.msra.mxu1 %v152_v19 }
  0x22   :  { %335 = vmatprep.subr.mxu1 %v151_v20 }
  0x23   :  { %336 = vmatpush3.msra.mxu1 %v151_v20 }
  0x24   :  { %337 = vmatprep.subr.mxu1 %v150_v21 }
  0x25   :  { %338 = vmatpush3.msra.mxu1 %v150_v21 }
  0xca   :  { %v306_v24 = vpop.f32.mrf.mxu0 }
  0xcb   :  { %v127_v25 = vadd.f32 %v306_v24, %v269_v23 }
  0xcc   :  { %v121_v26 = vpop.f32.mrf.mxu0 }
  0xcd   :  { %v133_v27 = vmul.f32 0.044715, %v127_v25  ;;  %v122_v28 = vadd.f32 %v269_v23, %v121_v26  ;;  %v131_v43 = vmul.f32 0.5, %v127_v25 }
  0xcf   :  { %v135_v29 = vmul.f32 %v133_v27, %v127_v25  ;;  %v132_v30 = vmul.f32 0.044715, %v122_v28  ;;  %v130_v41 = vmul.f32 0.5, %v122_v28 }
  0xd1   :  { %v134_v31 = vmul.f32 %v132_v30, %v122_v28  ;;  %v137_v32 = vmul.f32 %v135_v29, %v127_v25 }
  0xd3   :  { %v136_v33 = vmul.f32 %v134_v31, %v122_v28  ;;  %v139_v34 = vadd.f32 %v137_v32, %v127_v25 }
  0xd5   :  { %v138_v35 = vadd.f32 %v136_v33, %v122_v28  ;;  %v141_v36 = vmul.f32 0.7978846, %v139_v34 }
  0xd7   :  { %v140_v37 = vmul.f32 0.7978846, %v138_v35  ;;  %345 = vtanh.f32 %v141_v36 }
  0xd9   :  { %347 = vtanh.f32 %v140_v37 }
  0xe4   :  { %v346_v38 = vpop.eup %345 }
  0xe5   :  { %v145_v40 = vadd.f32 1.0, %v346_v38 }
  0xe6   :  { %v348_v39 = vpop.eup %347 }
  0xe7   :  { %v144_v42 = vadd.f32 1.0, %v348_v39  ;;  %v147_v45 = vmul.f32 %v145_v40, %v131_v43 }
  0xe9   :  { %v146_v44 = vmul.f32 %v144_v42, %v130_v41 }
  0xeb   :  { %339 = vmatprep.mubr.f32.mxu1 %v146_v44 }
  0xec   :  { %340 = vmatmul.mubr.f32.vlgmr.msra.gmra.mxu1 %v147_v45 }
 0x1ac   :  { %v341_v47 = vpop.f32.mrf.mxu1 }
 0x1ad   :  { %v242_v49 = vadd.f32 %v341_v47, %v149_v46 }
 0x1ae   :  { %v232_v50 = vpop.f32.mrf.mxu1 }
 0x1af   :  { %244 = vst.msk [vmem:[#allocation2 + $0x8] sm:$0xff] %vm32_vm0, %v242_v49  ;;  %v241_v51 = vadd.f32 %v232_v50, %v148_v48 }
 0x1b1   :  { %243 = vst.msk [vmem:[#allocation2] sm:$0xff] %vm32_vm0, %v241_v51 }
 0x1b6   :  { %v249_v52 = vld [vmem:[#allocation2 + $0x8] sm:$0xff] }
 0x1b7   :  { %251 = vst.msk [vmem:[#allocation3 + $0x8] sm:$0xff] %vm32_vm0, %v249_v52 }
 0x1b8   :  { %v248_v53 = vld [vmem:[#allocation2] sm:$0xff] }
 0x1b9   :  { %250 = vst.msk [vmem:[#allocation3] sm:$0xff] %vm32_vm0, %v248_v53 }
 0x1ba   :  { %360 = shalt.err (!%p357_p4)
}
 0x1bb   :  { %s372_s12 = smov 128   ;;  %s373_s13 = smov 8  }
 0x1bc   :  { %263 = dma.vmem_to_hbm [thread:$0]  %s258_s3, 256, %s492_s5, [#allocation4], %s372_s12, %s372_s12, %s373_s13  }
 0x1bd   :  { %369 = dma.done.wait [#allocation4], 256  }
 0x1be   :  { %370 = vsyncadd [#allocation4], 4294967040 }
 0x1bf   :  { %267 = vsyncpa [#allocation4], 1 }

</bundles_post_ra>
